<compile_context>
chip_gen: v5e
topology: v5e:2x2
jax: 0.10.0
libtpu: 0.0.40
codegen_flags: <defaults>
</compile_context>

<pallas_src>
import jax
import jax.numpy as jnp
from jax.experimental import pallas as pl
from jax.experimental.pallas import tpu as pltpu


_MAX_TILE_B = 4096  # multiple of 128; sweepable (see vmem_limit_bytes headroom)


def _mlp_kernel(x_ref, w1_ref, b1_ref, w2_ref, b2_ref,
                w3_ref, b3_ref, w4_ref, b4_ref, o_ref):
    """Fused MLP on one batch tile, computed transposed.

    x_ref: (Tb, F) f32      w_i: (out_i, in_i) bf16     b_i: (out_i, 1) f32
    o_ref: (Tb, O) f32
    """
    # In-kernel transpose (XLU) + cast to the MXU dtype: (Tb, F) -> (F, Tb).
    xt = x_ref[...].T.astype(w1_ref.dtype)

    h = jnp.dot(w1_ref[...], xt, preferred_element_type=jnp.float32) + b1_ref[...]
    h = jnp.maximum(h, 0.0).astype(w2_ref.dtype)                       # (H,  Tb)

    h = jnp.dot(w2_ref[...], h, preferred_element_type=jnp.float32) + b2_ref[...]
    h = jnp.maximum(h, 0.0).astype(w3_ref.dtype)                       # (2H, Tb)

    h = jnp.dot(w3_ref[...], h, preferred_element_type=jnp.float32) + b3_ref[...]
    h = jnp.maximum(h, 0.0).astype(w4_ref.dtype)                       # (H,  Tb)

    out_t = jnp.dot(w4_ref[...], h, preferred_element_type=jnp.float32) + b4_ref[...]
    # Transpose back (XLU) and store (Tb, O).  O=16 -> masked lanes on the
    # store, but that is cheaper than a separate XLA transpose pass over HBM.
    o_ref[...] = out_t.T.astype(o_ref.dtype)                           # (Tb, O)


def pred_forward(x, params, *, tile_b=None, mxu_dtype=jnp.bfloat16):
    """Pallas implementation of Pred.forward.

    x: (B, feature_size)
    params: w1..w4 in PyTorch (out_features, in_features) layout,
            b1..b4 stored as (out_features, 1).
    """
    B, F = x.shape
    H = params["w1"].shape[0]
    H2 = params["w2"].shape[0]
    O = params["w4"].shape[0]
    assert params["w1"].shape == (H, F)
    assert params["w2"].shape == (H2, H)
    assert params["w3"].shape == (H, H2)
    assert params["w4"].shape == (O, H)

    if tile_b is None:
        # Single full-array block for small/medium B (no padding at all);
        # otherwise large 128-aligned tiles to amortize per-grid-step overhead.
        tile_b = B if B <= _MAX_TILE_B else _MAX_TILE_B
    assert tile_b == B or tile_b % 128 == 0, "tile_b must be B or a multiple of 128"
    n_tiles = pl.cdiv(B, tile_b)

    def resident(shape):
        # Constant block index across the grid: operand is DMA'd once and
        # stays resident in VMEM for all batch tiles.
        return pl.BlockSpec(shape, lambda i: (0, 0))

    out = pl.pallas_call(
        _mlp_kernel,
        out_shape=jax.ShapeDtypeStruct((B, O), jnp.float32),
        grid_spec=pltpu.PrefetchScalarGridSpec(
            num_scalar_prefetch=0,
            grid=(n_tiles,),
            in_specs=[
                # x tile, untransposed; transpose happens in-kernel.
                # (If profiling shows exposed input DMA at very large B, add
                #  pipeline_mode=pl.Buffered(3) here.)
                pl.BlockSpec((tile_b, F), lambda i: (i, 0)),
                resident((H, F)),  resident((H, 1)),
                resident((H2, H)), resident((H2, 1)),
                resident((H, H2)), resident((H, 1)),
                resident((O, H)),  resident((O, 1)),
            ],
            out_specs=pl.BlockSpec((tile_b, O), lambda i: (i, 0)),
        ),
        compiler_params=pltpu.CompilerParams(
            dimension_semantics=("parallel",),   # batch tiles are independent
            vmem_limit_bytes=32 * 1024 * 1024,   # headroom for tile_b sweeps
        ),
    )(x,
      params["w1"].astype(mxu_dtype), params["b1"].astype(jnp.float32),
      params["w2"].astype(mxu_dtype), params["b2"].astype(jnp.float32),
      params["w3"].astype(mxu_dtype), params["b3"].astype(jnp.float32),
      params["w4"].astype(mxu_dtype), params["b4"].astype(jnp.float32))
    return out


def prepare_params(params, mxu_dtype=jnp.bfloat16):
    """Pre-cast weights to the MXU dtype once (outside the per-call path) so
    pred_forward's .astype() calls are no-ops and no convert kernels run."""
    return {k: (v.astype(mxu_dtype) if k.startswith("w") else v.astype(jnp.float32))
            for k, v in params.items()}


def init_params(key, feature_size, hidden_size, output_size, dtype=jnp.float32):
    """PyTorch-Linear-style init U(-1/sqrt(fan_in), 1/sqrt(fan_in)).

    Weights kept in PyTorch (out_features, in_features) layout; biases (out, 1).
    """
    dims = [
        ("1", feature_size, hidden_size),
        ("2", hidden_size, hidden_size * 2),
        ("3", hidden_size * 2, hidden_size),
        ("4", hidden_size, output_size),
    ]
    params = {}
    keys = jax.random.split(key, 2 * len(dims))
    for idx, (name, fan_in, fan_out) in enumerate(dims):
        bound = 1.0 / float(fan_in) ** 0.5
        wk, bk = keys[2 * idx], keys[2 * idx + 1]
        params[f"w{name}"] = jax.random.uniform(
            wk, (fan_out, fan_in), dtype, minval=-bound, maxval=bound)
        params[f"b{name}"] = jax.random.uniform(
            bk, (fan_out, 1), dtype, minval=-bound, maxval=bound)
    return params


def pred_reference(x, params, *, mxu_dtype=jnp.bfloat16):
    """Pure-JAX reference with the same bf16-operand / f32-accumulate recipe."""
    def layer(a, w, b, relu=True):
        y = jnp.dot(a.astype(mxu_dtype), w.astype(mxu_dtype).T,
                    preferred_element_type=jnp.float32) + b[:, 0]
        return jnp.maximum(y, 0.0) if relu else y

    h = layer(x, params["w1"], params["b1"])
    h = layer(h, params["w2"], params["b2"])
    h = layer(h, params["w3"], params["b3"])
    return layer(h, params["w4"], params["b4"], relu=False)


if __name__ == "__main__":
    feature_size, hidden_size, output_size = 32, 32, 16
    batch = 8

    key = jax.random.PRNGKey(0)
    kx, kp = jax.random.split(key)
    x = jax.random.normal(kx, (batch, feature_size), jnp.float32)
    params = prepare_params(init_params(kp, feature_size, hidden_size, output_size))

    fwd = jax.jit(pred_forward)
    out = jax.block_until_ready(fwd(x, params))

    ref = pred_reference(x, params)
    assert out.shape == (batch, output_size)
    assert jnp.allclose(out, ref, atol=2e-3, rtol=2e-3), (
        float(jnp.max(jnp.abs(out - ref))))

    print("KERNEL_OK")
</pallas_src>

<mosaic_0001>
module attributes {stable_mosaic.version = 11 : i64} {
  func.func @_mlp_kernel(%arg0: i32, %arg1: memref<8x32xf32, #tpu.memory_space<vmem>>, %arg2: memref<32x32xbf16, #tpu.memory_space<vmem>>, %arg3: memref<32x1xf32, #tpu.memory_space<vmem>>, %arg4: memref<64x32xbf16, #tpu.memory_space<vmem>>, %arg5: memref<64x1xf32, #tpu.memory_space<vmem>>, %arg6: memref<32x64xbf16, #tpu.memory_space<vmem>>, %arg7: memref<32x1xf32, #tpu.memory_space<vmem>>, %arg8: memref<16x32xbf16, #tpu.memory_space<vmem>>, %arg9: memref<16x1xf32, #tpu.memory_space<vmem>>, %arg10: memref<8x16xf32, #tpu.memory_space<vmem>>) attributes {dimension_semantics = [#tpu.dimension_semantics<parallel>], iteration_bounds = array<i64: 1>, scalar_prefetch = 0 : i64, scratch_operands = 0 : i64, tpu.core_type = #tpu.core_type<tc>, window_params = [{transform_indices = @transform_0, window_bounds = array<i64: 8, 32>}, {pipeline_mode = #tpu.pipeline_mode<synchronous>, transform_indices = @transform_1, window_bounds = array<i64: 32, 32>}, {pipeline_mode = #tpu.pipeline_mode<synchronous>, transform_indices = @transform_2, window_bounds = array<i64: 32, 1>}, {pipeline_mode = #tpu.pipeline_mode<synchronous>, transform_indices = @transform_3, window_bounds = array<i64: 64, 32>}, {pipeline_mode = #tpu.pipeline_mode<synchronous>, transform_indices = @transform_4, window_bounds = array<i64: 64, 1>}, {pipeline_mode = #tpu.pipeline_mode<synchronous>, transform_indices = @transform_5, window_bounds = array<i64: 32, 64>}, {pipeline_mode = #tpu.pipeline_mode<synchronous>, transform_indices = @transform_6, window_bounds = array<i64: 32, 1>}, {pipeline_mode = #tpu.pipeline_mode<synchronous>, transform_indices = @transform_7, window_bounds = array<i64: 16, 32>}, {pipeline_mode = #tpu.pipeline_mode<synchronous>, transform_indices = @transform_8, window_bounds = array<i64: 16, 1>}, {transform_indices = @transform_9, window_bounds = array<i64: 8, 16>}]} {
    %c0 = arith.constant 0 : index
    %c0_0 = arith.constant 0 : index
    %0 = vector.load %arg1[%c0, %c0_0] : memref<8x32xf32, #tpu.memory_space<vmem>>, vector<8x32xf32>
    %1 = tpu.transpose %0, [1, 0] : vector<8x32xf32> -> vector<32x8xf32>
    %2 = arith.truncf %1 : vector<32x8xf32> to vector<32x8xbf16>
    %c0_1 = arith.constant 0 : index
    %c0_2 = arith.constant 0 : index
    %3 = vector.load %arg2[%c0_1, %c0_2] : memref<32x32xbf16, #tpu.memory_space<vmem>>, vector<32x32xbf16>
    %cst = arith.constant dense<0.000000e+00> : vector<32x8xf32>
    %4 = tpu.matmul %3, %2, %cst {dimension_numbers = #tpu.dot_dimension_numbers<[1], [0], [0], [1], [0, 0, 1, 1], [], []>} : vector<32x32xbf16>, vector<32x8xbf16>, vector<32x8xf32> -> vector<32x8xf32>
    %c0_3 = arith.constant 0 : index
    %c0_4 = arith.constant 0 : index
    %5 = vector.load %arg3[%c0_3, %c0_4] : memref<32x1xf32, #tpu.memory_space<vmem>>, vector<32x1xf32>
    %6 = vector.broadcast %5 : vector<32x1xf32> to vector<32x8xf32>
    %7 = arith.addf %4, %6 : vector<32x8xf32>
    %cst_5 = arith.constant 0.000000e+00 : f32
    %8 = vector.broadcast %cst_5 : f32 to vector<32x8xf32>
    %9 = arith.maximumf %7, %8 : vector<32x8xf32>
    %10 = arith.truncf %9 : vector<32x8xf32> to vector<32x8xbf16>
    %c0_6 = arith.constant 0 : index
    %c0_7 = arith.constant 0 : index
    %11 = vector.load %arg4[%c0_6, %c0_7] : memref<64x32xbf16, #tpu.memory_space<vmem>>, vector<64x32xbf16>
    %cst_8 = arith.constant dense<0.000000e+00> : vector<64x8xf32>
    %12 = tpu.matmul %11, %10, %cst_8 {dimension_numbers = #tpu.dot_dimension_numbers<[1], [0], [0], [1], [0, 0, 1, 1], [], []>} : vector<64x32xbf16>, vector<32x8xbf16>, vector<64x8xf32> -> vector<64x8xf32>
    %c0_9 = arith.constant 0 : index
    %c0_10 = arith.constant 0 : index
    %13 = vector.load %arg5[%c0_9, %c0_10] : memref<64x1xf32, #tpu.memory_space<vmem>>, vector<64x1xf32>
    %14 = vector.broadcast %13 : vector<64x1xf32> to vector<64x8xf32>
    %15 = arith.addf %12, %14 : vector<64x8xf32>
    %cst_11 = arith.constant 0.000000e+00 : f32
    %16 = vector.broadcast %cst_11 : f32 to vector<64x8xf32>
    %17 = arith.maximumf %15, %16 : vector<64x8xf32>
    %18 = arith.truncf %17 : vector<64x8xf32> to vector<64x8xbf16>
    %c0_12 = arith.constant 0 : index
    %c0_13 = arith.constant 0 : index
    %19 = vector.load %arg6[%c0_12, %c0_13] : memref<32x64xbf16, #tpu.memory_space<vmem>>, vector<32x64xbf16>
    %cst_14 = arith.constant dense<0.000000e+00> : vector<32x8xf32>
    %20 = tpu.matmul %19, %18, %cst_14 {dimension_numbers = #tpu.dot_dimension_numbers<[1], [0], [0], [1], [0, 0, 1, 1], [], []>} : vector<32x64xbf16>, vector<64x8xbf16>, vector<32x8xf32> -> vector<32x8xf32>
    %c0_15 = arith.constant 0 : index
    %c0_16 = arith.constant 0 : index
    %21 = vector.load %arg7[%c0_15, %c0_16] : memref<32x1xf32, #tpu.memory_space<vmem>>, vector<32x1xf32>
    %22 = vector.broadcast %21 : vector<32x1xf32> to vector<32x8xf32>
    %23 = arith.addf %20, %22 : vector<32x8xf32>
    %cst_17 = arith.constant 0.000000e+00 : f32
    %24 = vector.broadcast %cst_17 : f32 to vector<32x8xf32>
    %25 = arith.maximumf %23, %24 : vector<32x8xf32>
    %26 = arith.truncf %25 : vector<32x8xf32> to vector<32x8xbf16>
    %c0_18 = arith.constant 0 : index
    %c0_19 = arith.constant 0 : index
    %27 = vector.load %arg8[%c0_18, %c0_19] : memref<16x32xbf16, #tpu.memory_space<vmem>>, vector<16x32xbf16>
    %cst_20 = arith.constant dense<0.000000e+00> : vector<16x8xf32>
    %28 = tpu.matmul %27, %26, %cst_20 {dimension_numbers = #tpu.dot_dimension_numbers<[1], [0], [0], [1], [0, 0, 1, 1], [], []>} : vector<16x32xbf16>, vector<32x8xbf16>, vector<16x8xf32> -> vector<16x8xf32>
    %c0_21 = arith.constant 0 : index
    %c0_22 = arith.constant 0 : index
    %29 = vector.load %arg9[%c0_21, %c0_22] : memref<16x1xf32, #tpu.memory_space<vmem>>, vector<16x1xf32>
    %30 = vector.broadcast %29 : vector<16x1xf32> to vector<16x8xf32>
    %31 = arith.addf %28, %30 : vector<16x8xf32>
    %32 = tpu.transpose %31, [1, 0] : vector<16x8xf32> -> vector<8x16xf32>
    %c0_23 = arith.constant 0 : index
    %c0_24 = arith.constant 0 : index
    %33 = vector.load %arg10[%c0_23, %c0_24] : memref<8x16xf32, #tpu.memory_space<vmem>>, vector<8x16xf32>
    tpu.vector_store %arg10[%c0_23, %c0_24], %32 {strides = array<i32>} : memref<8x16xf32, #tpu.memory_space<vmem>>, vector<8x16xf32>,
    return
  }
  func.func @transform_0(%arg0: i32) -> (i32, i32) {
    %c0_i32 = arith.constant 0 : i32
    %c0_i32_0 = arith.constant 0 : i32
    return %arg0, %c0_i32 : i32, i32
  }
  func.func @transform_1(%arg0: i32) -> (i32, i32) {
    %c0_i32 = arith.constant 0 : i32
    %c0_i32_0 = arith.constant 0 : i32
    %c0_i32_1 = arith.constant 0 : i32
    return %c0_i32, %c0_i32_0 : i32, i32
  }
  func.func @transform_2(%arg0: i32) -> (i32, i32) {
    %c0_i32 = arith.constant 0 : i32
    %c0_i32_0 = arith.constant 0 : i32
    %c0_i32_1 = arith.constant 0 : i32
    return %c0_i32, %c0_i32_0 : i32, i32
  }
  func.func @transform_3(%arg0: i32) -> (i32, i32) {
    %c0_i32 = arith.constant 0 : i32
    %c0_i32_0 = arith.constant 0 : i32
    %c0_i32_1 = arith.constant 0 : i32
    return %c0_i32, %c0_i32_0 : i32, i32
  }
  func.func @transform_4(%arg0: i32) -> (i32, i32) {
    %c0_i32 = arith.constant 0 : i32
    %c0_i32_0 = arith.constant 0 : i32
    %c0_i32_1 = arith.constant 0 : i32
    return %c0_i32, %c0_i32_0 : i32, i32
  }
  func.func @transform_5(%arg0: i32) -> (i32, i32) {
    %c0_i32 = arith.constant 0 : i32
    %c0_i32_0 = arith.constant 0 : i32
    %c0_i32_1 = arith.constant 0 : i32
    return %c0_i32, %c0_i32_0 : i32, i32
  }
  func.func @transform_6(%arg0: i32) -> (i32, i32) {
    %c0_i32 = arith.constant 0 : i32
    %c0_i32_0 = arith.constant 0 : i32
    %c0_i32_1 = arith.constant 0 : i32
    return %c0_i32, %c0_i32_0 : i32, i32
  }
  func.func @transform_7(%arg0: i32) -> (i32, i32) {
    %c0_i32 = arith.constant 0 : i32
    %c0_i32_0 = arith.constant 0 : i32
    %c0_i32_1 = arith.constant 0 : i32
    return %c0_i32, %c0_i32_0 : i32, i32
  }
  func.func @transform_8(%arg0: i32) -> (i32, i32) {
    %c0_i32 = arith.constant 0 : i32
    %c0_i32_0 = arith.constant 0 : i32
    %c0_i32_1 = arith.constant 0 : i32
    return %c0_i32, %c0_i32_0 : i32, i32
  }
  func.func @transform_9(%arg0: i32) -> (i32, i32) {
    %c0_i32 = arith.constant 0 : i32
    %c0_i32_0 = arith.constant 0 : i32
    return %arg0, %c0_i32 : i32, i32
  }
}

</mosaic_0001>

<bundles_post_ra>
// kernel: pred_forward.1
= control target key start
LH: loop header
LB: loop body
LE: loop exit
PB: predicated region body
PF: predicated region fallthrough
CT: control target
= control target key end

     0   :  { %s658_s0 = inlined_call_operand.vmem [shape: f32[8,32], index: 0, kind: input, shape index: {}]   ;;  %s659_s1 = inlined_call_operand.vmem [shape: bf16[32,32], index: 1, kind: input, shape index: {}]   ;;  %s660_s2 = inlined_call_operand.vmem [shape: f32[32,1], index: 2, kind: input, shape index: {}]   ;;  %s661_s3 = inlined_call_operand.vmem [shape: bf16[64,32], index: 3, kind: input, shape index: {}]   ;;  %s662_s4 = inlined_call_operand.vmem [shape: f32[64,1], index: 4, kind: input, shape index: {}]   ;;  %s663_s5 = inlined_call_operand.vmem [shape: bf16[32,64], index: 5, kind: input, shape index: {}]   ;;  %s664_s6 = inlined_call_operand.vmem [shape: f32[32,1], index: 6, kind: input, shape index: {}]   ;;  %s665_s7 = inlined_call_operand.vmem [shape: bf16[16,32], index: 7, kind: input, shape index: {}]   ;;  %s666_s8 = inlined_call_operand.vmem [shape: f32[16,1], index: 8, kind: input, shape index: {}]   ;;  %s667_s9 = inlined_call_operand.hbm [shape: f32[8,16], index: 9, kind: output, shape index: {}]  }
   0x1   :  { %v34_v0 = vld [vmem:[%s658_s0] sm:$0xff] }
   0x2   :  { %14 = vsyncpa [#allocation3], 0  ;;  %35 = vxpose.xlu0.b32.start.end [1/1] (short) (narrow) %v34_v0, 32  ;;  %v512_v1 = vmov 0   ;;  %v76_v2 = vld [vmem:[%s660_s2 + $0x18] sm:$0xff]  ;;  %v73_v3 = vld [vmem:[%s660_s2] sm:$0xff] }
   0x3   :  { %484 = vset.pattern.permute.xlu1 %v512_v1  ;;  %485 = vset.pattern.permute.xlu2 %v512_v1  ;;  %v154_v4 = vld [vmem:[%s662_s4 + $0x38] sm:$0xff]  ;;  %v152_v5 = vld [vmem:[%s662_s4 + $0x28] sm:$0xff]  ;;  %v153_v11 = vld [vmem:[%s662_s4 + $0x30] sm:$0xff]  ;;  %vm107_vm0 = vcmask 261120   ;;  %vm306_vm1 = vcmask 523264   ;;  %s513_s14 = smov [#allocation2]  }
   0x4   :  { %94 = vperm.xlu1 %484, %v76_v2   ;;  %v150_v6 = vld [vmem:[%s662_s4 + $0x18] sm:$0xff]  ;;  %v74_v8 = vld [vmem:[%s660_s2 + $0x8] sm:$0xff]  ;;  %v151_v14 = vld [vmem:[%s662_s4 + $0x20] sm:$0xff]  ;;  %s413_s15 = sshll.u32 %s513_s14, 4  ;;  %s415_s0 = sshll.u32 %s667_s9, 4  ;;  %vm406_vm2 = vcmask 130048   ;;  %s414_s15 = int_to_ptr.vmem [resolvable:$true] %s413_s15  ;;  %s416_s0 = int_to_ptr.hbm [resolvable:$true] %s415_s0 }
   0x5   :  { %84 = vperm.xlu2 %485, %v74_v8   ;;  %v148_v9 = vld [vmem:[%s662_s4 + $0x8] sm:$0xff]  ;;  %v275_v12 = vld [vmem:[%s664_s6 + $0x18] sm:$0xff]  ;;  %v75_v15 = vld [vmem:[%s660_s2 + $0x10] sm:$0xff] }
   0x6   :  { %v273_v16 = vld [vmem:[%s664_s6 + $0x8] sm:$0xff]  ;;  %v149_v18 = vld [vmem:[%s662_s4 + $0x10] sm:$0xff]  ;;  %v469_v21 = vld [vmem:[%s659_s1] sm:$0xff] }
   0x7   :  { %v341_v22 = vld [vmem:[%s666_s8 + $0x8] sm:$0xff]  ;;  %v147_v23 = vld [vmem:[%s662_s4] sm:$0xff]  ;;  %v274_v24 = vld [vmem:[%s664_s6 + $0x10] sm:$0xff] }
   0x8   :  { %v470_v25 = vld [vmem:[%s659_s1 + $0x8] sm:$0xff]  ;;  %v272_v26 = vld [vmem:[%s664_s6] sm:$0xff]  ;;  %v474_v47 = vld [vmem:[%s661_s3 + $0x18] sm:$0xff] }
   0x9   :  { %v340_v27 = vld [vmem:[%s666_s8] sm:$0xff]  ;;  %v472_v48 = vld [vmem:[%s661_s3 + $0x8] sm:$0xff]  ;;  %v473_v49 = vld [vmem:[%s661_s3 + $0x10] sm:$0xff] }
   0xa   :  { %v471_v46 = vld [vmem:[%s661_s3] sm:$0xff] }
   0xc   :  { %79 = vperm.xlu1 %484, %v73_v3  }
   0xd   :  { %187 = vperm.xlu2 %485, %v153_v11  }
  0x14   :  { %192 = vperm.xlu1 %484, %v154_v4  }
  0x15   :  { %177 = vperm.xlu2 %485, %v151_v14  }
  0x1c   :  { %182 = vperm.xlu1 %484, %v152_v5  }
  0x1d   :  { %167 = vperm.xlu2 %485, %v149_v18  }
  0x24   :  { %172 = vperm.xlu1 %484, %v150_v6  }
  0x25   :  { %157 = vperm.xlu2 %485, %v147_v23   ;;  %v476_v23 = vld [vmem:[%s663_s5 + $0x8] sm:$0xff] }
  0x2c   :  { %162 = vperm.xlu1 %484, %v148_v9  }
  0x2d   :  { %288 = vperm.xlu2 %485, %v274_v24  }
  0x34   :  { %293 = vperm.xlu1 %484, %v275_v12  }
  0x35   :  { %278 = vperm.xlu2 %485, %v272_v26  }
  0x3c   :  { %283 = vperm.xlu1 %484, %v273_v16  }
  0x3d   :  { %344 = vperm.xlu2 %485, %v340_v27  }
  0x44   :  { %349 = vperm.xlu1 %484, %v341_v22   ;;  %v475_v22 = vld [vmem:[%s663_s5] sm:$0xff] }
  0x5f   :  { %v85_v34 = vpop.permute.xlu2 %84 }
  0x67   :  { %v188_v53 = vpop.permute.xlu2 %187 }
  0x69   :  { %483 = vset.pattern.permute.xlu0 %v512_v1 }
  0x6f   :  { %v178_v0 = vpop.permute.xlu2 %177 }
  0x76   :  { %v95_v30 = vpop.permute.xlu1 %94 }
  0x77   :  { %v168_v3 = vpop.permute.xlu2 %167 }
  0x7e   :  { %v80_v38 = vpop.permute.xlu1 %79 }
  0x86   :  { %v193_v55 = vpop.permute.xlu1 %192 }
  0x88   :  { %89 = vperm.xlu0 %483, %v75_v15   ;;  %v158_v15 = vpop.permute.xlu2 %157 }
  0x8e   :  { %v183_v62 = vpop.permute.xlu1 %182 }
  0x90   :  { %v289_v27 = vpop.permute.xlu2 %288 }
  0x96   :  { %v173_v2 = vpop.permute.xlu1 %172 }
  0x9e   :  { %v163_v11 = vpop.permute.xlu1 %162 }
  0xa6   :  { %v51_v7 = vpop.trf.xlu0  ;;  %v294_v26 = vpop.permute.xlu1 %293 }
  0xae   :  { %v52_v10 = vpop.trf.xlu0 }
  0xaf   :  { %v67_v20 = vpack.c.bf16 %v52_v10, %v51_v7 }
  0xb6   :  { %v53_v13 = vpop.trf.xlu0 }
  0xbe   :  { %v54_v17 = vpop.trf.xlu0 }
  0xbf   :  { %v68_v19 = vpack.c.bf16 %v54_v17, %v53_v13 }
  0xc1   :  { %120 = vmatpush.bf16.msra.mxu0 %v68_v19 }
  0xc5   :  { %121 = vmatpush.bf16.msra.mxu0 %v67_v20 }
  0xc8   :  { %432 = vmatmul.msk.bf16.vlgmr.msra.gmra.mxu0 %vm107_vm0, %v469_v21 }
  0xd8   :  { %433 = vmatmul.msk.bf16.gmra.mxu0 %vm107_vm0, %v470_v25 }
  0xfa   :  { %v90_v32 = vpop.permute.xlu0 %89 }
 0x145   :  { %v123_v28 = vpop.f32.mrf.mxu0 }
 0x146   :  { %v124_v39 = vadd.f32 %v123_v28, %v80_v38 }
 0x148   :  { %v133_v44 = vmax.f32 %v124_v39, 0.0 }
 0x14d   :  { %v125_v29 = vpop.f32.mrf.mxu0 }
 0x14e   :  { %v126_v36 = vadd.f32 %v125_v29, %v85_v34  ;;  %v279_v34 = vpop.permute.xlu2 %278 }
 0x150   :  { %v134_v42 = vmax.f32 %v126_v36, 0.0 }
 0x152   :  { %v137_v45 = vpack.c.bf16 %v134_v42, %v133_v44  ;;  %v477_v42 = vld [vmem:[%s665_s7] sm:$0xff] }
 0x155   :  { %v128_v31 = vpop.f32.mrf.mxu0 }
 0x156   :  { %v129_v33 = vadd.f32 %v128_v31, %v90_v32 }
 0x158   :  { %v135_v40 = vmax.f32 %v129_v33, 0.0 }
 0x15d   :  { %v130_v35 = vpop.f32.mrf.mxu0 }
 0x15e   :  { %v131_v37 = vadd.f32 %v130_v35, %v95_v30  ;;  %v284_v30 = vpop.permute.xlu1 %283 }
 0x160   :  { %v136_v41 = vmax.f32 %v131_v37, 0.0 }
 0x162   :  { %v138_v43 = vpack.c.bf16 %v136_v41, %v135_v40 }
 0x164   :  { %233 = vmatpush.bf16.msra.mxu1 %v138_v43  ;;  %478 = vmatpush.bf16.msra.mxu3 %v138_v43  ;;  %v345_v43 = vpop.permute.xlu2 %344 }
 0x168   :  { %234 = vmatpush.bf16.msra.mxu1 %v137_v45  ;;  %479 = vmatpush.bf16.msra.mxu3 %v137_v45 }
 0x16b   :  { %450 = vmatmul.msk.bf16.vlgmr.msra.gmra.mxu1 %vm107_vm0, %v471_v46  ;;  %453 = vmatmul.msk.bf16.vlgmr.msra.gmra.mxu3 %vm107_vm0, %v474_v47  ;;  %v350_v46 = vpop.permute.xlu1 %349 }
 0x17b   :  { %451 = vmatmul.msk.bf16.gmra.mxu1 %vm107_vm0, %v472_v48 }
 0x18b   :  { %452 = vmatmul.msk.bf16.gmra.mxu1 %vm107_vm0, %v473_v49 }
 0x1e8   :  { %v236_v50 = vpop.f32.mrf.mxu1 }
 0x1e9   :  { %v237_v16 = vadd.f32 %v236_v50, %v158_v15 }
 0x1eb   :  { %v256_v20 = vmax.f32 %v237_v16, 0.0 }
 0x1ee   :  { %v251_v51 = vpop.f32.mrf.mxu3 }
 0x1ef   :  { %v252_v54 = vadd.f32 %v251_v51, %v188_v53 }
 0x1f0   :  { %v238_v52 = vpop.f32.mrf.mxu1 }
 0x1f1   :  { %v262_v59 = vmax.f32 %v252_v54, 0.0  ;;  %v239_v12 = vadd.f32 %v238_v52, %v163_v11 }
 0x1f3   :  { %v257_v18 = vmax.f32 %v239_v12, 0.0 }
 0x1f5   :  { %v264_v21 = vpack.c.bf16 %v257_v18, %v256_v20 }
 0x1f6   :  { %v253_v56 = vpop.f32.mrf.mxu3 }
 0x1f7   :  { %v254_v57 = vadd.f32 %v253_v56, %v193_v55 }
 0x1f8   :  { %v241_v58 = vpop.f32.mrf.mxu1 }
 0x1f9   :  { %v263_v60 = vmax.f32 %v254_v57, 0.0  ;;  %v242_v8 = vadd.f32 %v241_v58, %v168_v3 }
 0x1fb   :  { %v267_v61 = vpack.c.bf16 %v263_v60, %v262_v59  ;;  %v258_v17 = vmax.f32 %v242_v8, 0.0 }
 0x1fd   :  { %317 = vmatpush.bf16.msra.mxu2 %v267_v61 }
 0x200   :  { %v243_v63 = vpop.f32.mrf.mxu1 }
 0x201   :  { %v244_v6 = vadd.f32 %v243_v63, %v173_v2 }
 0x203   :  { %v259_v13 = vmax.f32 %v244_v6, 0.0 }
 0x205   :  { %v265_v19 = vpack.c.bf16 %v259_v13, %v258_v17 }
 0x208   :  { %v246_v1 = vpop.f32.mrf.mxu1 }
 0x209   :  { %v247_v4 = vadd.f32 %v246_v1, %v178_v0 }
 0x20b   :  { %v260_v9 = vmax.f32 %v247_v4, 0.0 }
 0x210   :  { %v248_v5 = vpop.f32.mrf.mxu1 }
 0x211   :  { %v249_v7 = vadd.f32 %v248_v5, %v183_v62 }
 0x213   :  { %v261_v10 = vmax.f32 %v249_v7, 0.0 }
 0x215   :  { %v266_v14 = vpack.c.bf16 %v261_v10, %v260_v9 }
 0x217   :  { %318 = vmatpush.bf16.msra.mxu2 %v266_v14 }
 0x21b   :  { %319 = vmatpush.bf16.msra.mxu2 %v265_v19 }
 0x21f   :  { %320 = vmatpush.bf16.msra.mxu2 %v264_v21 }
 0x222   :  { %462 = vmatmul.msk.bf16.vlgmr.msra.gmra.mxu2 %vm306_vm1, %v475_v22 }
 0x232   :  { %463 = vmatmul.msk.bf16.gmra.mxu2 %vm306_vm1, %v476_v23 }
 0x2a5   :  { %v322_v24 = vpop.f32.mrf.mxu2 }
 0x2a6   :  { %v323_v35 = vadd.f32 %v322_v24, %v279_v34 }
 0x2a8   :  { %v332_v40 = vmax.f32 %v323_v35, 0.0 }
 0x2ad   :  { %v324_v25 = vpop.f32.mrf.mxu2 }
 0x2ae   :  { %v325_v32 = vadd.f32 %v324_v25, %v284_v30 }
 0x2b0   :  { %v333_v38 = vmax.f32 %v325_v32, 0.0 }
 0x2b2   :  { %v336_v41 = vpack.c.bf16 %v333_v38, %v332_v40 }
 0x2b5   :  { %v327_v28 = vpop.f32.mrf.mxu2 }
 0x2b6   :  { %v328_v29 = vadd.f32 %v327_v28, %v289_v27 }
 0x2b8   :  { %v334_v36 = vmax.f32 %v328_v29, 0.0 }
 0x2bd   :  { %v329_v31 = vpop.f32.mrf.mxu2 }
 0x2be   :  { %v330_v33 = vadd.f32 %v329_v31, %v294_v26 }
 0x2c0   :  { %v335_v37 = vmax.f32 %v330_v33, 0.0 }
 0x2c2   :  { %v337_v39 = vpack.c.bf16 %v335_v37, %v334_v36 }
 0x2c4   :  { %366 = vmatpush.bf16.msrb.mxu3 %v337_v39 }
 0x2c8   :  { %367 = vmatpush.bf16.msrb.mxu3 %v336_v41 }
 0x2cb   :  { %468 = vmatmul.msk.bf16.vlgmr.msrb.gmra.mxu3 %vm107_vm0, %v477_v42 }
 0x34e   :  { %v369_v44 = vpop.f32.mrf.mxu3 }
 0x34f   :  { %v370_v45 = vadd.f32 %v369_v44, %v345_v43 }
 0x351   :  { %374 = vxpose.xlu2.b32.start [1/2] (short) (narrow) %v370_v45, 8 }
 0x356   :  { %v371_v47 = vpop.f32.mrf.mxu3 }
 0x357   :  { %v372_v48 = vadd.f32 %v371_v47, %v350_v46 }
 0x359   :  { %375 = vxpose.xlu2.b32.end [2/2] (short) (narrow) %v372_v48, 8 }
 0x3ea   :  { %v390_v49 = vpop.trf.xlu2 }
 0x3eb   :  { %407 = vst.msk [vmem:[#allocation2] sm:$0xff] %vm406_vm2, %v390_v49 }
 0x3ec   :  { %418 = dma.vmem_to_hbm [thread:$0]  %s414_s15, 128, %s416_s0, [#allocation3]  }
 0x3ed   :  { %510 = dma.done.wait [#allocation3], 128  }
 0x3ee   :  { %511 = vsyncadd [#allocation3], 4294967168 }
 0x3ef   :  { %423 = vsyncpa [#allocation3], 1 }

</bundles_post_ra>
